<compile_context>
chip_gen: v7x
topology: tpu7x:2x2x1
jax: 0.10.0
libtpu: 0.0.40
codegen_flags: <defaults>
</compile_context>

<pallas_src>
import math

import jax
import jax.numpy as jnp
from jax.experimental import pallas as pl
from jax.experimental.pallas import tpu as pltpu


# --------------------------------------------------------------------------
# Kernel 1: GraphConv score (norm='none', out_dim=1), (row, K)-tiled A matvec.
#   score[tile] = sum_k A[tile, k_tile] @ xw[k_tile] + b
# --------------------------------------------------------------------------
def _score_kernel(a_ref, xw_ref, b_ref, score_ref, acc_ref):
    # a_ref  : (tm, tk) A tile in its stored dtype (f32 or bf16; 0/1 exact)
    # xw_ref : (tk, 1)  f32 hoisted X @ W slice
    # b_ref  : (1,)     f32 bias in SMEM
    # acc_ref: (tm, 1)  f32 accumulator scratch (lives across the K axis)
    kk = pl.program_id(1)

    @pl.when(kk == 0)
    def _():
        acc_ref[...] = jnp.zeros_like(acc_ref)

    acc_ref[...] += jnp.dot(a_ref[...], xw_ref[...],
                            preferred_element_type=jnp.float32)

    @pl.when(kk == pl.num_programs(1) - 1)
    def _():
        score_ref[...] = acc_ref[...] + b_ref[0]


def graphconv_score(adj, xw, bias, *, tile_m=512, tile_k=2048,
                    vmem_limit_bytes=None):
    """score = adj @ xw + bias, streamed in (tile_m, tile_k) blocks of adj."""
    N = adj.shape[0]
    tile_m = min(tile_m, N)
    tile_k = min(tile_k, N)
    assert N % tile_m == 0 and N % tile_k == 0, (
        "N must be a multiple of the chosen tiles (pad the graph batch).")
    # VMEM budget: double-buffered A tiles dominate -> 2 * tm * tk * itemsize.
    # Defaults (512, 2048) fit the 32 MiB scoped default in bf16 and f32;
    # raise vmem_limit_bytes (v6e has headroom) or shrink tile_k on v5e/v7x.
    cp = dict(dimension_semantics=("parallel", "arbitrary"))
    if vmem_limit_bytes is not None:
        cp["vmem_limit_bytes"] = vmem_limit_bytes
    return pl.pallas_call(
        _score_kernel,
        out_shape=jax.ShapeDtypeStruct((N, 1), jnp.float32),
        grid=(N // tile_m, N // tile_k),
        in_specs=[
            pl.BlockSpec((tile_m, tile_k), lambda i, k: (i, k)),  # A tile
            pl.BlockSpec((tile_k, 1), lambda i, k: (k, 0)),       # xw slice
            pl.BlockSpec(memory_space=pltpu.MemorySpace.SMEM),    # bias scalar
        ],
        out_specs=pl.BlockSpec((tile_m, 1), lambda i, k: (i, 0)),
        scratch_shapes=[pltpu.VMEM((tile_m, 1), jnp.float32)],
        compiler_params=pltpu.CompilerParams(**cp),
    )(adj, xw, bias)


# --------------------------------------------------------------------------
# Kernel 2: per-superblock (G graphs) pooling / feature transform.
#   Xp[row] = X[selected] * tanh(score[selected])   via one-hot MXU gather.
# --------------------------------------------------------------------------
def _pool_kernel(idx_ref, x_ref, s_ref, o_ref):
    # idx_ref: (G*k_pad, 1) int32 within-superblock row index (>= rows => pad)
    # x_ref  : (G*npg, D)   f32 feature superblock
    # s_ref  : (G*npg, 1)   f32 score superblock
    # o_ref  : (G*k_pad, D) f32 pooled superblock
    rows = x_ref.shape[0]
    out_rows = o_ref.shape[0]
    col = jax.lax.broadcasted_iota(jnp.int32, (out_rows, rows), 1)
    onehot = (col == idx_ref[...]).astype(jnp.float32)   # block-diag selection
    gx = jnp.dot(onehot, x_ref[...], preferred_element_type=jnp.float32)
    gs = jnp.dot(onehot, s_ref[...], preferred_element_type=jnp.float32)
    o_ref[...] = gx * jnp.tanh(gs)                        # tanh on k rows only


def pool_features(feat, score, local_idx, nodes_per_graph, k,
                  *, graphs_per_step=None):
    N, D = feat.shape
    npg = nodes_per_graph
    num_graphs = N // npg
    k_pad = ((k + 7) // 8) * 8                       # sublane-align the output

    if graphs_per_step is None:
        # Batch graphs per step until the superblock has >= ~1024 node rows
        # (or we run out of graphs) to amortize per-grid-step overhead.
        graphs_per_step = 1
        for d in range(1, num_graphs + 1):
            if num_graphs % d == 0 and d * npg <= 1024:
                graphs_per_step = d
    G = graphs_per_step
    assert num_graphs % G == 0

    # Within-superblock row index for each kept node; sentinel (>= G*npg) for
    # padded slots -> all-zero one-hot row -> zero output row (sliced off).
    g_off = (jnp.arange(num_graphs, dtype=jnp.int32) % G) * npg          # (B,)
    idx_sb = local_idx.astype(jnp.int32) + g_off[:, None]                # (B, k)
    idx_full = jnp.full((num_graphs, k_pad), jnp.int32(G * npg), jnp.int32)
    idx_full = idx_full.at[:, :k].set(idx_sb)
    idx_col = idx_full.reshape(num_graphs * k_pad, 1)                    # (B*k_pad, 1)

    out = pl.pallas_call(
        _pool_kernel,
        out_shape=jax.ShapeDtypeStruct((num_graphs * k_pad, D), jnp.float32),
        grid=(num_graphs // G,),
        in_specs=[
            pl.BlockSpec((G * k_pad, 1), lambda s: (s, 0)),   # indices
            pl.BlockSpec((G * npg, D), lambda s: (s, 0)),     # features
            pl.BlockSpec((G * npg, 1), lambda s: (s, 0)),     # scores
        ],
        out_specs=pl.BlockSpec((G * k_pad, D), lambda s: (s, 0)),
        compiler_params=pltpu.CompilerParams(
            dimension_semantics=("parallel",)),
    )(idx_col, feat, score)

    return out.reshape(num_graphs, k_pad, D)[:, :k, :].reshape(num_graphs * k, D)


# --------------------------------------------------------------------------
# SAGPool forward (glue in JAX, hot paths in Pallas)
# --------------------------------------------------------------------------
class SAGPoolPallas:
    def __init__(self, in_dim, ratio=0.5, key=None):
        self.in_dim = in_dim
        self.ratio = ratio
        key = jax.random.PRNGKey(42) if key is None else key
        # Xavier-uniform init for the (in_dim, 1) GraphConv weight, zero bias.
        limit = math.sqrt(6.0 / (in_dim + 1))
        self.weight = jax.random.uniform(
            key, (in_dim, 1), jnp.float32, minval=-limit, maxval=limit)
        self.bias = jnp.zeros((1,), jnp.float32)

    def __call__(self, adj, feat, nodes_per_graph, num_graphs,
                 *, tile_m=512, tile_k=2048, vmem_limit_bytes=None):
        N, D = feat.shape
        assert N == nodes_per_graph * num_graphs
        assert nodes_per_graph % 8 == 0, "pad each graph segment to a multiple of 8 nodes"

        # Hoisted tiny matvec keeps the Pallas kernel a pure streaming A-matvec.
        # xw stays f32 for strict parity with the reference score.
        xw = (feat @ self.weight).astype(jnp.float32)            # (N, 1)

        # Stream A in its STORED dtype. If the adjacency is kept persistently
        # in bf16 (0/1 is exact) pass it as bf16 -- never cast per call, the
        # XLA cast reads/writes more HBM than the bf16 kernel read saves.
        score = graphconv_score(adj, xw, self.bias, tile_m=tile_m,
                                tile_k=tile_k,
                                vmem_limit_bytes=vmem_limit_bytes)   # (N, 1)
        score_flat = score[:, 0]                                     # .squeeze()

        # --- per-graph top-k (equal-sized segments) ---
        k = int(math.ceil(self.ratio * nodes_per_graph))
        seg_scores = score_flat.reshape(num_graphs, nodes_per_graph)
        _, idx = jax.lax.top_k(seg_scores, k)                        # (B, k) local idx
        idx = idx.astype(jnp.int32)
        offsets = (jnp.arange(num_graphs, dtype=jnp.int32)
                   * nodes_per_graph)[:, None]
        perm = (idx + offsets).reshape(-1)                           # (B*k,) global idx
        next_batch_num_nodes = jnp.full((num_graphs,), k, jnp.int32)

        # --- batched one-hot MXU gather + tanh-scale via Pallas pool kernel ---
        pooled = pool_features(feat, score, idx, nodes_per_graph, k)

        # TODO(synk): dgl.node_subgraph + edge histogram (next_batch_num_edges)
        #             have no Pallas equivalent; omitted.
        return pooled, perm, next_batch_num_nodes


# --------------------------------------------------------------------------
if __name__ == "__main__":
    key = jax.random.PRNGKey(0)
    k_feat, k_adj, k_w = jax.random.split(key, 3)

    num_graphs = 2
    nodes_per_graph = 16        # ratio=0.5 -> k=8 (already sublane-aligned)
    N = num_graphs * nodes_per_graph
    D = 128                     # lane-dense feature / pooled-output slabs

    feat = jax.random.normal(k_feat, (N, D), jnp.float32)

    # Block-diagonal random adjacency (edges only within each graph), A[dst, src].
    block_mask = jnp.kron(jnp.eye(num_graphs, dtype=jnp.float32),
                          jnp.ones((nodes_per_graph, nodes_per_graph), jnp.float32))
    rand_edges = (jax.random.uniform(k_adj, (N, N)) < 0.4).astype(jnp.float32)
    adj = rand_edges * block_mask

    module = SAGPoolPallas(in_dim=D, ratio=0.5, key=k_w)
    pooled, perm, nbn = module(adj, feat, nodes_per_graph, num_graphs)
    jax.block_until_ready((pooled, perm, nbn))

    # Pure-JAX reference check of the fused Pallas pipeline.
    score_ref = (adj @ (feat @ module.weight) + module.bias)[:, 0]
    pooled_ref = feat[perm] * jnp.tanh(score_ref[perm])[:, None]
    assert pooled.shape == (num_graphs * 8, D)
    assert jnp.allclose(pooled, pooled_ref, atol=1e-5, rtol=1e-5)

    print("KERNEL_OK")
</pallas_src>

<mosaic_0001>
module attributes {stable_mosaic.version = 11 : i64} {
  func.func @_score_kernel(%arg0: i32, %arg1: i32, %arg2: memref<32x32xf32, #tpu.memory_space<vmem>>, %arg3: memref<32x1xf32, #tpu.memory_space<vmem>>, %arg4: memref<1xf32, #tpu.memory_space<smem>>, %arg5: memref<32x1xf32, #tpu.memory_space<vmem>>, %arg6: memref<32x1xf32, #tpu.memory_space<vmem>>) attributes {dimension_semantics = [#tpu.dimension_semantics<parallel>, #tpu.dimension_semantics<arbitrary>], iteration_bounds = array<i64: 1, 1>, scalar_prefetch = 0 : i64, scratch_operands = 1 : i64, tpu.core_type = #tpu.core_type<tc>, window_params = [{transform_indices = @transform_0, window_bounds = array<i64: 32, 32>}, {transform_indices = @transform_1, window_bounds = array<i64: 32, 1>}, {transform_indices = @transform_2, window_bounds = array<i64: 1>}, {transform_indices = @transform_3, window_bounds = array<i64: 32, 1>}]} {
    %c0_i32 = arith.constant 0 : i32
    %0 = arith.cmpi eq, %arg1, %c0_i32 : i32
    %1 = arith.extui %0 : i1 to i32
    %c0_i32_0 = arith.constant 0 : i32
    %2 = arith.cmpi ne, %1, %c0_i32_0 : i32
    scf.if %2 {
      %cst_10 = arith.constant 0.000000e+00 : f32
      %12 = vector.broadcast %cst_10 : f32 to vector<32x1xf32>
      %c0_11 = arith.constant 0 : index
      %c0_12 = arith.constant 0 : index
      %13 = vector.load %arg6[%c0_11, %c0_12] : memref<32x1xf32, #tpu.memory_space<vmem>>, vector<32x1xf32>
      tpu.vector_store %arg6[%c0_11, %c0_12], %12 {strides = array<i32>} : memref<32x1xf32, #tpu.memory_space<vmem>>, vector<32x1xf32>,
    } else {
    }
    %c0 = arith.constant 0 : index
    %c0_1 = arith.constant 0 : index
    %3 = vector.load %arg6[%c0, %c0_1] : memref<32x1xf32, #tpu.memory_space<vmem>>, vector<32x1xf32>
    %c0_2 = arith.constant 0 : index
    %c0_3 = arith.constant 0 : index
    %4 = vector.load %arg2[%c0_2, %c0_3] : memref<32x32xf32, #tpu.memory_space<vmem>>, vector<32x32xf32>
    %c0_4 = arith.constant 0 : index
    %c0_5 = arith.constant 0 : index
    %5 = vector.load %arg3[%c0_4, %c0_5] : memref<32x1xf32, #tpu.memory_space<vmem>>, vector<32x1xf32>
    %cst = arith.constant dense<0.000000e+00> : vector<32x1xf32>
    %6 = tpu.matmul %4, %5, %cst {dimension_numbers = #tpu.dot_dimension_numbers<[1], [0], [0], [1], [0, 0, 1, 1], [], []>} : vector<32x32xf32>, vector<32x1xf32>, vector<32x1xf32> -> vector<32x1xf32>
    %7 = arith.addf %3, %6 : vector<32x1xf32>
    %c0_6 = arith.constant 0 : index
    %c0_7 = arith.constant 0 : index
    %8 = vector.load %arg6[%c0_6, %c0_7] : memref<32x1xf32, #tpu.memory_space<vmem>>, vector<32x1xf32>
    tpu.vector_store %arg6[%c0_6, %c0_7], %7 {strides = array<i32>} : memref<32x1xf32, #tpu.memory_space<vmem>>, vector<32x1xf32>,
    %c0_i32_8 = arith.constant 0 : i32
    %9 = arith.cmpi eq, %arg1, %c0_i32_8 : i32
    %10 = arith.extui %9 : i1 to i32
    %c0_i32_9 = arith.constant 0 : i32
    %11 = arith.cmpi ne, %10, %c0_i32_9 : i32
    scf.if %11 {
      %c0_10 = arith.constant 0 : index
      %c0_11 = arith.constant 0 : index
      %12 = vector.load %arg6[%c0_10, %c0_11] : memref<32x1xf32, #tpu.memory_space<vmem>>, vector<32x1xf32>
      %c0_12 = arith.constant 0 : index
      %13 = memref.load %arg4[%c0_12] : memref<1xf32, #tpu.memory_space<smem>>
      %14 = vector.broadcast %13 : f32 to vector<32x1xf32>
      %15 = arith.addf %12, %14 : vector<32x1xf32>
      %c0_13 = arith.constant 0 : index
      %c0_14 = arith.constant 0 : index
      %16 = vector.load %arg5[%c0_13, %c0_14] : memref<32x1xf32, #tpu.memory_space<vmem>>, vector<32x1xf32>
      tpu.vector_store %arg5[%c0_13, %c0_14], %15 {strides = array<i32>} : memref<32x1xf32, #tpu.memory_space<vmem>>, vector<32x1xf32>,
    } else {
    }
    return
  }
  func.func @transform_0(%arg0: i32, %arg1: i32) -> (i32, i32) {
    %c0_i32 = arith.constant 0 : i32
    return %arg0, %arg1 : i32, i32
  }
  func.func @transform_1(%arg0: i32, %arg1: i32) -> (i32, i32) {
    %c0_i32 = arith.constant 0 : i32
    %c0_i32_0 = arith.constant 0 : i32
    return %arg1, %c0_i32 : i32, i32
  }
  func.func @transform_2(%arg0: i32, %arg1: i32) -> i32 {
    %c0_i32 = arith.constant 0 : i32
    %c0_i32_0 = arith.constant 0 : i32
    return %c0_i32 : i32
  }
  func.func @transform_3(%arg0: i32, %arg1: i32) -> (i32, i32) {
    %c0_i32 = arith.constant 0 : i32
    %c0_i32_0 = arith.constant 0 : i32
    return %arg0, %c0_i32 : i32, i32
  }
}

</mosaic_0001>

<bundles_post_ra>
// kernel: tpu_custom_call.1
= control target key start
LH: loop header
LB: loop body
LE: loop exit
PB: predicated region body
PF: predicated region fallthrough
CT: control target
= control target key end

     0   :  { %vm36_vm0 = vcmask 261120   ;;  %vm19_vm1 = vcmask 7168   ;;  %v203_v3 = vmov 0.0   ;;  %s279_s1 = inlined_call_operand.vmem [shape: f32[32,1], index: 1, kind: input, shape index: {}]   ;;  %s280_s0 = inlined_call_operand.vmem [shape: f32[32,32], index: 0, kind: input, shape index: {}]   ;;  %s281_s2 = inlined_call_operand.<no memory space> [shape: f32[1], index: 2, kind: input, shape index: {}]   ;;  %s282_s3 = inlined_call_operand.vmem [shape: f32[32,1], index: 3, kind: output, shape index: {}]  }
   0x1   :  { %v32_v0 = vld [vmem:[%s279_s1] sm:$0xff]  ;;  %v33_v1 = vld [vmem:[%s279_s1 + $0x8] sm:$0xff]  ;;  %v34_v2 = vld [vmem:[%s279_s1 + $0x10] sm:$0xff]  ;;  %21 = vst.msk [vmem:[#allocation2 + $0x8] sm:$0xff] %vm19_vm1, %v203_v3  ;;  %v151_v23 = vstv %s281_s2 }
   0x2   :  { %20 = vst.msk [vmem:[#allocation2] sm:$0xff] %vm19_vm1, %v203_v3  ;;  %22 = vst.msk [vmem:[#allocation2 + $0x10] sm:$0xff] %vm19_vm1, %v203_v3  ;;  %v190_v4 = vpack.c.bf16 %v33_v1, %v32_v0  ;;  %v35_v5 = vld [vmem:[%s279_s1 + $0x18] sm:$0xff]  ;;  %v28_v6 = vld [vmem:[%s280_s0] sm:$0xff] }
   0x3   :  { %23 = vst.msk [vmem:[#allocation2 + $0x18] sm:$0xff] %vm19_vm1, %v203_v3  ;;  %v30_v7 = vld [vmem:[%s280_s0 + $0x10] sm:$0xff]  ;;  %v194_v8 = vpack.c.bf16 %v35_v5, %v34_v2  ;;  %184 = vmatprep.mubr.msk.f32.mxu0 %vm36_vm0, %v28_v6  ;;  %v29_v9 = vld [vmem:[%s280_s0 + $0x8] sm:$0xff]  ;;  %v31_v10 = vld [vmem:[%s280_s0 + $0x18] sm:$0xff] }
   0x4   :  { %187 = vmatprep.mubr.msk.f32.mxu1 %vm36_vm0, %v30_v7  ;;  %191 = vmatprep.subr.bf16.mxu0 %v190_v4 }
   0x5   :  { %198 = vmatprep.subr.bf16.mxu1 %v190_v4  ;;  %193 = vmatpush3.bf16.msra.mxu0 %v190_v4 }
   0x6   :  { %200 = vmatpush3.bf16.msra.mxu1 %v190_v4  ;;  %195 = vmatprep.subr.bf16.mxu0 %v194_v8 }
   0x7   :  { %199 = vmatprep.subr.bf16.mxu1 %v194_v8 }
   0x8   :  { %v25_v11 = vld [vmem:[#allocation2 + $0x8] sm:$0xff] }
   0x9   :  { %197 = vmatpush3.bf16.msra.mxu0 %v194_v8  ;;  %v24_v13 = vld [vmem:[#allocation2] sm:$0xff]  ;;  %v26_v14 = vld [vmem:[#allocation2 + $0x10] sm:$0xff] }
   0xa   :  { %201 = vmatpush3.bf16.msra.mxu1 %v194_v8  ;;  %v27_v12 = vld [vmem:[#allocation2 + $0x18] sm:$0xff] }
   0xc   :  { %185 = vmatmul.mubr.msk.f32.vlgmr.msra.gmra.mrb[0].mxu0 %vm36_vm0, %v29_v9 }
   0xd   :  { %188 = vmatmul.mubr.msk.f32.vlgmr.msra.gmra.mrb[0].mxu1 %vm36_vm0, %v31_v10 }
  0xdf   :  { %v186_v15 = vpop.f32.mrb[0].mxu0 }
  0xe0   :  { %v189_v16 = vpop.f32.mrb[0].mxu1  ;;  %v135_v17 = vadd.f32 %v186_v15, %v25_v11  ;;  %v115_v19 = vpop.f32.mrb[1].mxu0 }
  0xe1   :  { %v137_v18 = vadd.f32 %v189_v16, %v27_v12  ;;  %v125_v20 = vpop.f32.mrb[1].mxu1  ;;  %v134_v21 = vadd.f32 %v115_v19, %v24_v13 }
  0xe2   :  { %v136_v22 = vadd.f32 %v125_v20, %v26_v14  ;;  %140 = vst.msk [vmem:[#allocation2 + $0x8] sm:$0xff] %vm19_vm1, %v135_v17 }
  0xe3   :  { %142 = vst.msk [vmem:[#allocation2 + $0x18] sm:$0xff] %vm19_vm1, %v137_v18  ;;  %139 = vst.msk [vmem:[#allocation2] sm:$0xff] %vm19_vm1, %v134_v21 }
  0xe4   :  { %141 = vst.msk [vmem:[#allocation2 + $0x10] sm:$0xff] %vm19_vm1, %v136_v22 }
  0xe9   :  { %v147_v24 = vld [vmem:[#allocation2 + $0x8] sm:$0xff] }
  0xea   :  { %v149_v25 = vld [vmem:[#allocation2 + $0x18] sm:$0xff]  ;;  %v153_v26 = vadd.f32 %v151_v23, %v147_v24  ;;  %v146_v28 = vld [vmem:[#allocation2] sm:$0xff] }
  0xeb   :  { %v155_v27 = vadd.f32 %v151_v23, %v149_v25  ;;  %v148_v29 = vld [vmem:[#allocation2 + $0x10] sm:$0xff]  ;;  %v152_v30 = vadd.f32 %v151_v23, %v146_v28 }
  0xec   :  { %v154_v31 = vadd.f32 %v151_v23, %v148_v29  ;;  %157 = vst.msk [vmem:[%s282_s3 + $0x8] sm:$0xff] %vm19_vm1, %v153_v26 }
  0xed   :  { %159 = vst.msk [vmem:[%s282_s3 + $0x18] sm:$0xff] %vm19_vm1, %v155_v27  ;;  %156 = vst.msk [vmem:[%s282_s3] sm:$0xff] %vm19_vm1, %v152_v30 }
  0xee   :  { %158 = vst.msk [vmem:[%s282_s3 + $0x10] sm:$0xff] %vm19_vm1, %v154_v31 }

</bundles_post_ra>
